<compile_context>
chip_gen: v6e
topology: v6e:2x2x1
jax: 0.10.0
libtpu: 0.0.40
codegen_flags: <defaults>
</compile_context>

<pallas_src>
import jax
import jax.numpy as jnp
from jax import lax
from jax.experimental import pallas as pl
from jax.experimental.pallas import tpu as pltpu


def _linear_leaky_kernel(x_ref, w_ref, b_ref, o_ref):
    # x: (m, K), w: (N, K) (PyTorch Linear layout), b: (1, N), o: (m, N)
    # Contract the K dim of both operands (== x @ w.T) on the MXU, f32 accumulate.
    v1 = lax.dot_general(
        x_ref[...], w_ref[...],
        dimension_numbers=(((1,), (1,)), ((), ())),
        preferred_element_type=jnp.float32,
    )
    v1 = v1 + b_ref[...]                        # (m, N) + (1, N) broadcast (VPU)
    v4 = jnp.where(v1 > 0, v1, v1 * 0.01)       # LeakyReLU(0.01), NaN-propagating
    o_ref[...] = v4.astype(o_ref.dtype)


def linear_leaky(x, w, b, *, row_tile=256):
    """x: (M, K) f32, w: (N, K) f32 (PyTorch Linear weight layout), b: (N,) f32."""
    M, K = x.shape
    N, Kw = w.shape
    assert K == Kw
    b2 = b.reshape(1, N)   # cheap host-side reshape for in-kernel broadcast

    itemsize = jnp.dtype(x.dtype).itemsize
    cost = pl.CostEstimate(
        flops=2 * M * K * N,
        transcendentals=0,
        bytes_accessed=(M * K + N * K + N + M * N) * itemsize,
    )

    use_grid = (M > row_tile) and (M % row_tile == 0)

    if not use_grid:
        # Single-shot, grid-less call: whole arrays in VMEM, no pipeline buffers.
        vmem = pl.BlockSpec(memory_space=pltpu.MemorySpace.VMEM)
        return pl.pallas_call(
            _linear_leaky_kernel,
            out_shape=jax.ShapeDtypeStruct((M, N), x.dtype),
            in_specs=[vmem, vmem, vmem],
            out_specs=vmem,
            cost_estimate=cost,
        )(x, w, b2)

    # Batched path: tile M on a "parallel" grid axis (megacore sharding on v7x).
    # Weight/bias blocks are the full arrays and map to block (0, 0) every step,
    # so they stay VMEM-resident and the weight is fetched from HBM once.
    grid = (M // row_tile,)
    return pl.pallas_call(
        _linear_leaky_kernel,
        out_shape=jax.ShapeDtypeStruct((M, N), x.dtype),
        grid_spec=pltpu.PrefetchScalarGridSpec(
            num_scalar_prefetch=0,
            grid=grid,
            in_specs=[
                pl.BlockSpec((row_tile, K), lambda i: (i, 0)),
                pl.BlockSpec((N, K), lambda i: (0, 0)),
                pl.BlockSpec((1, N), lambda i: (0, 0)),
            ],
            out_specs=pl.BlockSpec((row_tile, N), lambda i: (i, 0)),
        ),
        compiler_params=pltpu.CompilerParams(
            dimension_semantics=("parallel",)),
        cost_estimate=cost,
    )(x, w, b2)


def reference(x, w, b):
    v1 = x @ w.T + b
    return jnp.where(v1 > 0, v1, v1 * 0.01)


if __name__ == "__main__":
    key = jax.random.PRNGKey(0)
    kx, kw, kb, kxb = jax.random.split(key, 4)

    in_features, out_features = 2784, 28
    # Deterministic synthetic parameters (shapes from nn.Linear(2784, 28)).
    bound = 1.0 / jnp.sqrt(in_features)
    w = jax.random.uniform(kw, (out_features, in_features),
                           minval=-bound, maxval=bound, dtype=jnp.float32)
    b = jax.random.uniform(kb, (out_features,),
                           minval=-bound, maxval=bound, dtype=jnp.float32)

    # Spec input: (1, 2784) — grid-less single-shot path.
    x1 = jax.random.normal(kx, (1, in_features), dtype=jnp.float32)
    out = jax.block_until_ready(linear_leaky(x1, w, b))
    ref = reference(x1, w, b)
    assert out.shape == (1, out_features)
    assert jnp.allclose(out, ref, atol=1e-5, rtol=1e-5)

    # Batched call (per perf review): amortizes launch + the weight HBM read,
    # exercises the "parallel"-gridded path (2 tiles of 256 rows).
    xb = jax.random.normal(kxb, (512, in_features), dtype=jnp.float32)
    outb = jax.block_until_ready(linear_leaky(xb, w, b, row_tile=256))
    refb = reference(xb, w, b)
    assert outb.shape == (512, out_features)
    assert jnp.allclose(outb, refb, atol=1e-4, rtol=1e-4)

    print("KERNEL_OK")
</pallas_src>

<mosaic_0001>
module attributes {stable_mosaic.version = 11 : i64} {
  func.func @_linear_leaky_kernel(%arg0: memref<1x2784xf32, #tpu.memory_space<vmem>>, %arg1: memref<28x2784xf32, #tpu.memory_space<vmem>>, %arg2: memref<1x28xf32, #tpu.memory_space<vmem>>, %arg3: memref<1x28xf32, #tpu.memory_space<vmem>>) attributes {dimension_semantics = [], scalar_prefetch = 0 : i64, scratch_operands = 0 : i64, tpu.core_type = #tpu.core_type<tc>} {
    %c0 = arith.constant 0 : index
    %c0_0 = arith.constant 0 : index
    %0 = vector.load %arg0[%c0, %c0_0] : memref<1x2784xf32, #tpu.memory_space<vmem>>, vector<1x2784xf32>
    %c0_1 = arith.constant 0 : index
    %c0_2 = arith.constant 0 : index
    %1 = vector.load %arg1[%c0_1, %c0_2] : memref<28x2784xf32, #tpu.memory_space<vmem>>, vector<28x2784xf32>
    %cst = arith.constant dense<0.000000e+00> : vector<1x28xf32>
    %2 = tpu.matmul %0, %1, %cst {dimension_numbers = #tpu.dot_dimension_numbers<[1], [1], [0], [0], [0, 0, 1, 0], [], []>} : vector<1x2784xf32>, vector<28x2784xf32>, vector<1x28xf32> -> vector<1x28xf32>
    %c0_3 = arith.constant 0 : index
    %c0_4 = arith.constant 0 : index
    %3 = vector.load %arg2[%c0_3, %c0_4] : memref<1x28xf32, #tpu.memory_space<vmem>>, vector<1x28xf32>
    %4 = arith.addf %2, %3 : vector<1x28xf32>
    %cst_5 = arith.constant 0.000000e+00 : f32
    %5 = vector.broadcast %cst_5 : f32 to vector<1x28xf32>
    %6 = arith.cmpf ogt, %4, %5 : vector<1x28xf32>
    %cst_6 = arith.constant 0.00999999977 : f32
    %7 = vector.broadcast %cst_6 : f32 to vector<1x28xf32>
    %8 = arith.mulf %4, %7 : vector<1x28xf32>
    %9 = arith.select %6, %4, %8 : vector<1x28xi1>, vector<1x28xf32>
    %c0_7 = arith.constant 0 : index
    %c0_8 = arith.constant 0 : index
    %10 = vector.load %arg3[%c0_7, %c0_8] : memref<1x28xf32, #tpu.memory_space<vmem>>, vector<1x28xf32>
    tpu.vector_store %arg3[%c0_7, %c0_8], %9 {strides = array<i32>} : memref<1x28xf32, #tpu.memory_space<vmem>>, vector<1x28xf32>,
    return
  }
}

</mosaic_0001>

<bundles_post_ra>
// kernel: tpu_custom_call.1
= control target key start
LH: loop header
LB: loop body
LE: loop exit
PB: predicated region body
PF: predicated region fallthrough
CT: control target
= control target key end

     0   :  { %8 = vsyncpa [#allocation3], 0  ;;  %s1245_s0 = inlined_call_operand.hbm [shape: f32[1,2784], index: 0, kind: input, shape index: {}]   ;;  %s1246_s1 = inlined_call_operand.hbm [shape: f32[28,2784], index: 1, kind: input, shape index: {}]   ;;  %s1247_s2 = inlined_call_operand.vmem [shape: f32[1,28], index: 2, kind: input, shape index: {}]   ;;  %s1248_s3 = inlined_call_operand.hbm [shape: f32[1,28], index: 3, kind: output, shape index: {}]  }
   0x1   :  { %9 = vsyncpa [#allocation6], 0 }
   0x2   :  { %10 = vsyncpa [#allocation4], 0  ;;  %s1127_s12 = smov [#allocation2]   ;;  %s1128_s14 = smov [#allocation5]  }
   0x3   :  { %s17_s13 = sshll.u32 %s1127_s12, 4  ;;  %s26_s15 = sshll.u32 %s1128_s14, 4  ;;  %s18_s13 = int_to_ptr.vmem [resolvable:$true] %s17_s13  ;;  %s27_s15 = int_to_ptr.vmem [resolvable:$true] %s26_s15 }
   0x4   :  { %s1069_s16 = scalar_lea.vmem %s18_s13, 352  ;;  %p1074_p1 = scmp.lt.s32.totalorder %s18_s13, %s18_s13 }
   0x5   :  { %p1070_p0 = scmp.ne.s32.totalorder %s18_s13, %s1069_s16  ;;  %p1075_p2 = scmp.lt.s32.totalorder %s1069_s16, %s1069_s16 }
   0x7   :  { %p1076_p3 = por %p1075_p2, %p1074_p1 }
   0x9   :  { %p1077_p4 = pnand %p1076_p3, %p1070_p0 }
   0xb   :  { %1080 = shalt.err (!%p1077_p4)
}
   0xc   :  { %20 = dma.hbm_to_vmem [thread:$0]  %s1245_s0, 352, %s18_s13, [#allocation3]  }
   0xd   :  { %s1089_s19 = scalar_lea.vmem %s27_s15, 11264  ;;  %p1094_p6 = scmp.lt.s32.totalorder %s27_s15, %s27_s15 }
   0xe   :  { %p1090_p5 = scmp.ne.s32.totalorder %s27_s15, %s1089_s19  ;;  %p1095_p7 = scmp.lt.s32.totalorder %s1089_s19, %s1089_s19 }
  0x10   :  { %p1096_p8 = por %p1095_p7, %p1094_p6 }
  0x12   :  { %p1097_p9 = pnand %p1096_p8, %p1090_p5 }
  0x14   :  { %1100 = shalt.err (!%p1097_p9)
}
  0x15   :  { %s1129_s20 = smov 2816   ;;  %s1130_s21 = smov 176  }
  0x16   :  { %32 = dma.hbm_to_vmem [thread:$0]  %s1246_s1, 11264, %s27_s15, [#allocation6], %s1129_s20, %s1129_s20, %s1130_s21  }
  0x17   :  { %1121 = dma.done.wait [#allocation3], 352  }
  0x18   :  { %1122 = vsyncadd [#allocation3], 4294966944 }
  0x19   :  { %1123 = dma.done.wait [#allocation6], 11264  }
  0x1a   :  { %1124 = vsyncadd [#allocation6], 4294956032  ;;  %v136_v0 = vlaneseq  ;;  %v111_v2 = vld [vmem:[#allocation5 + $0x218] sm:$0xf]  ;;  %v110_v3 = vld [vmem:[#allocation5 + $0x210] sm:$0xf] }
  0x1b   :  { %v113_v4 = vld [vmem:[#allocation5 + $0x228] sm:$0xf]  ;;  %284 = vmatprep.subr.mxu0 %v111_v2  ;;  %v112_v5 = vld [vmem:[#allocation5 + $0x220] sm:$0xf]  ;;  %v91_v7 = vld [vmem:[#allocation5 + $0x178] sm:$0xff]  ;;  %vm245_vm0 = vcmask 785408  }
  0x1c   :  { %v1158_v1 = vshrl.u32 %v136_v0, 7  ;;  %354 = vmatprep.subr.mxu1 %v113_v4  ;;  %v89_v6 = vld [vmem:[#allocation5 + $0x168] sm:$0xff]  ;;  %285 = vmatpush1.xpose.msra.mxu0 %v110_v3  ;;  %v88_v10 = vld [vmem:[#allocation5 + $0x160] sm:$0xff]  ;;  %v90_v11 = vld [vmem:[#allocation5 + $0x170] sm:$0xff]  ;;  %vm1033_vm2 = vcmask 221184  }
  0x1d   :  { %355 = vmatpush1.xpose.msra.mxu1 %v112_v5  ;;  %286 = vmatprep.subr.mxu0 %v89_v6  ;;  %v67_v12 = vld [vmem:[#allocation5 + $0xb8] sm:$0xff]  ;;  %v69_v13 = vld [vmem:[#allocation5 + $0xc8] sm:$0xff]  ;;  %v66_v17 = vld [vmem:[#allocation5 + $0xb0] sm:$0xff] }
  0x1e   :  { %v1161_v8 = vsub.s32 1, %v1158_v1  ;;  %v1164_v9 = vsub.s32 3, %v1158_v1  ;;  %356 = vmatprep.subr.mxu1 %v91_v7  ;;  %v1166_v14 = vld [vmem:[#allocation2] sm:$0xff]  ;;  %v68_v18 = vld [vmem:[#allocation5 + $0xc0] sm:$0xff]  ;;  %v47_v20 = vld [vmem:[#allocation5 + $0x18] sm:$0xff]  ;;  %v1173_v21 = vsub.s32 0, %v1158_v1 }
  0x1f   :  { %v45_v19 = vld [vmem:[#allocation5 + $0x8] sm:$0xff]  ;;  %v1176_v22 = vsub.s32 2, %v1158_v1  ;;  %v44_v23 = vld [vmem:[#allocation5] sm:$0xff]  ;;  %v46_v24 = vld [vmem:[#allocation5 + $0x10] sm:$0xff]  ;;  %v1179_v27 = vsub.s32 5, %v1158_v1  ;;  %v166_v28 = vsub.s32 7, %v1158_v1 }
  0x20   :  { %287 = vmatpush1.xpose.msra.mxu0 %v88_v10  ;;  %v143_v15 = vrot.slane %v1166_v14, %v1161_v8  ;;  %v151_v16 = vrot.slane %v1166_v14, %v1164_v9  ;;  %v115_v25 = vld [vmem:[#allocation5 + $0x238] sm:$0xf]  ;;  %v117_v26 = vld [vmem:[#allocation5 + $0x248] sm:$0xf]  ;;  %v139_v29 = vrot.slane %v1166_v14, %v1173_v21  ;;  %v114_v31 = vld [vmem:[#allocation5 + $0x230] sm:$0xf] }
  0x21   :  { %357 = vmatpush1.xpose.msra.mxu1 %v90_v11  ;;  %288 = vmatprep.subr.mxu0 %v67_v12  ;;  %v147_v30 = vrot.slane %v1166_v14, %v1176_v22  ;;  %v116_v32 = vld [vmem:[#allocation5 + $0x240] sm:$0xf]  ;;  %v93_v33 = vld [vmem:[#allocation5 + $0x188] sm:$0xff]  ;;  %v95_v34 = vld [vmem:[#allocation5 + $0x198] sm:$0xff]  ;;  %v159_v35 = vrot.slane %v1166_v14, %v1179_v27  ;;  %v167_v36 = vrot.slane %v1166_v14, %v166_v28  ;;  %v1192_v45 = vsub.s32 4, %v1158_v1 }
  0x22   :  { %358 = vmatprep.subr.mxu1 %v69_v13  ;;  %324 = vmatprep.mubr.f32.mxu0 %v143_v15  ;;  %v92_v37 = vld [vmem:[#allocation5 + $0x180] sm:$0xff]  ;;  %v94_v38 = vld [vmem:[#allocation5 + $0x190] sm:$0xff]  ;;  %v71_v39 = vld [vmem:[#allocation5 + $0xd8] sm:$0xff]  ;;  %v162_v46 = vsub.s32 6, %v1158_v1 }
  0x23   :  { %394 = vmatprep.mubr.f32.mxu1 %v151_v16  ;;  %v73_v40 = vld [vmem:[#allocation5 + $0xe8] sm:$0xff]  ;;  %v70_v41 = vld [vmem:[#allocation5 + $0xd0] sm:$0xff]  ;;  %v72_v42 = vld [vmem:[#allocation5 + $0xe0] sm:$0xff]  ;;  %v155_v51 = vrot.slane %v1166_v14, %v1192_v45 }
  0x24   :  { %289 = vmatpush1.xpose.msra.mxu0 %v66_v17  ;;  %v49_v43 = vld [vmem:[#allocation5 + $0x28] sm:$0xff]  ;;  %v51_v44 = vld [vmem:[#allocation5 + $0x38] sm:$0xff]  ;;  %v48_v47 = vld [vmem:[#allocation5 + $0x20] sm:$0xff]  ;;  %v163_v52 = vrot.slane %v1166_v14, %v162_v46 }
  0x25   :  { %359 = vmatpush1.xpose.msra.mxu1 %v68_v18  ;;  %290 = vmatprep.subr.mxu0 %v45_v19  ;;  %v50_v48 = vld [vmem:[#allocation5 + $0x30] sm:$0xff]  ;;  %v119_v49 = vld [vmem:[#allocation5 + $0x258] sm:$0xf]  ;;  %v121_v50 = vld [vmem:[#allocation5 + $0x268] sm:$0xf] }
  0x26   :  { %360 = vmatprep.subr.mxu1 %v47_v20  ;;  %v1200_v53 = vld [vmem:[#allocation2 + $0x8] sm:$0xff]  ;;  %v120_v55 = vld [vmem:[#allocation5 + $0x260] sm:$0xf]  ;;  %v97_v56 = vld [vmem:[#allocation5 + $0x1a8] sm:$0xff] }
  0x27   :  { %v118_v54 = vld [vmem:[#allocation5 + $0x250] sm:$0xf]  ;;  %v99_v57 = vld [vmem:[#allocation5 + $0x1b8] sm:$0xff]  ;;  %v175_v58 = vrot.slane %v1200_v53, %v1161_v8  ;;  %v183_v59 = vrot.slane %v1200_v53, %v1164_v9  ;;  %v96_v60 = vld [vmem:[#allocation5 + $0x1a0] sm:$0xff]  ;;  %v171_v11 = vrot.slane %v1200_v53, %v1173_v21  ;;  %v179_v12 = vrot.slane %v1200_v53, %v1176_v22 }
  0x28   :  { %291 = vmatpush1.xpose.msra.mxu0 %v44_v23  ;;  %v98_v61 = vld [vmem:[#allocation5 + $0x1b0] sm:$0xff]  ;;  %v75_v62 = vld [vmem:[#allocation5 + $0xf8] sm:$0xff]  ;;  %v77_v63 = vld [vmem:[#allocation5 + $0x108] sm:$0xff]  ;;  %v191_v17 = vrot.slane %v1200_v53, %v1179_v27  ;;  %v199_v18 = vrot.slane %v1200_v53, %v166_v28 }
  0x29   :  { %361 = vmatpush1.xpose.msra.mxu1 %v46_v24  ;;  %424 = vmatprep.subr.mxu0 %v115_v25  ;;  %v74_v0 = vld [vmem:[#allocation5 + $0xf0] sm:$0xff]  ;;  %v76_v2 = vld [vmem:[#allocation5 + $0x100] sm:$0xff]  ;;  %v53_v3 = vld [vmem:[#allocation5 + $0x48] sm:$0xff] }
  0x2a   :  { %494 = vmatprep.subr.mxu1 %v117_v26  ;;  %v55_v4 = vld [vmem:[#allocation5 + $0x58] sm:$0xff]  ;;  %v52_v5 = vld [vmem:[#allocation5 + $0x40] sm:$0xff]  ;;  %v54_v6 = vld [vmem:[#allocation5 + $0x50] sm:$0xff] }
  0x2b   :  { %325 = vmatmul.mubr.f32.vlgmr.msra.gmra.mxu0 %v139_v29  ;;  %v123_v7 = vld [vmem:[#allocation5 + $0x278] sm:$0xf]  ;;  %v125_v10 = vld [vmem:[#allocation5 + $0x288] sm:$0xf]  ;;  %v122_v13 = vld [vmem:[#allocation5 + $0x270] sm:$0xf] }
  0x2c   :  { %395 = vmatmul.mubr.f32.vlgmr.msra.gmra.mxu1 %v147_v30  ;;  %425 = vmatpush1.xpose.msra.mxu0 %v114_v31  ;;  %v124_v14 = vld [vmem:[#allocation5 + $0x280] sm:$0xf]  ;;  %v101_v15 = vld [vmem:[#allocation5 + $0x1c8] sm:$0xff]  ;;  %v103_v16 = vld [vmem:[#allocation5 + $0x1d8] sm:$0xff] }
  0x2d   :  { %495 = vmatpush1.xpose.msra.mxu1 %v116_v32  ;;  %426 = vmatprep.subr.mxu0 %v93_v33  ;;  %v100_v19 = vld [vmem:[#allocation5 + $0x1c0] sm:$0xff]  ;;  %v102_v20 = vld [vmem:[#allocation5 + $0x1d0] sm:$0xff]  ;;  %v79_v23 = vld [vmem:[#allocation5 + $0x118] sm:$0xff] }
  0x2e   :  { %496 = vmatprep.subr.mxu1 %v95_v34  ;;  %464 = vmatprep.mubr.f32.mxu0 %v159_v35  ;;  %v81_v24 = vld [vmem:[#allocation5 + $0x128] sm:$0xff]  ;;  %v78_v25 = vld [vmem:[#allocation5 + $0x110] sm:$0xff]  ;;  %v80_v26 = vld [vmem:[#allocation5 + $0x120] sm:$0xff]  ;;  %v187_v34 = vrot.slane %v1200_v53, %v1192_v45  ;;  %v195_v35 = vrot.slane %v1200_v53, %v162_v46 }
  0x2f   :  { %534 = vmatprep.mubr.f32.mxu1 %v167_v36  ;;  %v57_v29 = vld [vmem:[#allocation5 + $0x68] sm:$0xff]  ;;  %v59_v28 = vld [vmem:[#allocation5 + $0x78] sm:$0xff]  ;;  %v56_v30 = vld [vmem:[#allocation5 + $0x60] sm:$0xff] }
  0x30   :  { %427 = vmatpush1.xpose.msra.mxu0 %v92_v37  ;;  %v58_v31 = vld [vmem:[#allocation5 + $0x70] sm:$0xff]  ;;  %v127_v32 = vld [vmem:[#allocation5 + $0x298] sm:$0xf]  ;;  %v129_v33 = vld [vmem:[#allocation5 + $0x2a8] sm:$0xf] }
  0x31   :  { %497 = vmatpush1.xpose.msra.mxu1 %v94_v38  ;;  %428 = vmatprep.subr.mxu0 %v71_v39  ;;  %v1220_v36 = vld [vmem:[#allocation2 + $0x10] sm:$0x3f]  ;;  %v126_v37 = vld [vmem:[#allocation5 + $0x290] sm:$0xf]  ;;  %v128_v38 = vld [vmem:[#allocation5 + $0x2a0] sm:$0xf] }
  0x32   :  { %498 = vmatprep.subr.mxu1 %v73_v40  ;;  %v105_v39 = vld [vmem:[#allocation5 + $0x1e8] sm:$0xff]  ;;  %v107_v40 = vld [vmem:[#allocation5 + $0x1f8] sm:$0xff]  ;;  %v104_v1 = vld [vmem:[#allocation5 + $0x1e0] sm:$0xff]  ;;  %v211_v53 = vrot.slane %v1220_v36, %v1176_v22 }
  0x33   :  { %v85_v46 = vld [vmem:[#allocation5 + $0x148] sm:$0xff]  ;;  %v86_v22 = vld [vmem:[#allocation5 + $0x150] sm:$0xff] }
  0x34   :  { %429 = vmatpush1.xpose.msra.mxu0 %v70_v41  ;;  %v207_v41 = vrot.slane %v1220_v36, %v1161_v8  ;;  %v84_v8 = vld [vmem:[#allocation5 + $0x140] sm:$0xff] }
  0x35   :  { %499 = vmatpush1.xpose.msra.mxu1 %v72_v42  ;;  %430 = vmatprep.subr.mxu0 %v49_v43  ;;  %v215_v42 = vrot.slane %v1220_v36, %v1164_v9  ;;  %v106_v43 = vld [vmem:[#allocation5 + $0x1f0] sm:$0xff]  ;;  %v63_v9 = vld [vmem:[#allocation5 + $0x98] sm:$0xff] }
  0x36   :  { %500 = vmatprep.subr.mxu1 %v51_v44  ;;  %v83_v44 = vld [vmem:[#allocation5 + $0x138] sm:$0xff] }
  0x38   :  { %431 = vmatpush1.xpose.msra.mxu0 %v48_v47  ;;  %v82_v47 = vld [vmem:[#allocation5 + $0x130] sm:$0xff] }
  0x39   :  { %501 = vmatpush1.xpose.msra.mxu1 %v50_v48  ;;  %564 = vmatprep.subr.mxu0 %v119_v49  ;;  %v61_v48 = vld [vmem:[#allocation5 + $0x88] sm:$0xff]  ;;  %v60_v49 = vld [vmem:[#allocation5 + $0x80] sm:$0xff] }
  0x3a   :  { %634 = vmatprep.subr.mxu1 %v121_v50  ;;  %v62_v50 = vld [vmem:[#allocation5 + $0x90] sm:$0xff] }
  0x3b   :  { %465 = vmatmul.mubr.f32.vlgmr.msra.gmra.mxu0 %v155_v51  ;;  %v131_v51 = vld [vmem:[#allocation5 + $0x2b8] sm:$0xf] }
  0x3c   :  { %535 = vmatmul.mubr.f32.vlgmr.msra.gmra.mxu1 %v163_v52  ;;  %565 = vmatpush1.xpose.msra.mxu0 %v118_v54  ;;  %v203_v52 = vrot.slane %v1220_v36, %v1173_v21  ;;  %v223_v54 = vrot.slane %v1220_v36, %v1179_v27  ;;  %v108_v21 = vld [vmem:[#allocation5 + $0x200] sm:$0xff] }
  0x3d   :  { %635 = vmatpush1.xpose.msra.mxu1 %v120_v55  ;;  %566 = vmatprep.subr.mxu0 %v97_v56  ;;  %v130_v55 = vld [vmem:[#allocation5 + $0x2b0] sm:$0xf]  ;;  %v109_v56 = vld [vmem:[#allocation5 + $0x208] sm:$0xff]  ;;  %v64_v27 = vld [vmem:[#allocation5 + $0xa0] sm:$0xff] }
  0x3e   :  { %636 = vmatprep.subr.mxu1 %v99_v57  ;;  %604 = vmatprep.mubr.f32.mxu0 %v175_v58  ;;  %v87_v57 = vld [vmem:[#allocation5 + $0x158] sm:$0xff]  ;;  %v65_v58 = vld [vmem:[#allocation5 + $0xa8] sm:$0xff] }
  0x3f   :  { %674 = vmatprep.mubr.f32.mxu1 %v183_v59  ;;  %v219_v59 = vrot.slane %v1220_v36, %v1192_v45 }
  0x40   :  { %567 = vmatpush1.xpose.msra.mxu0 %v96_v60 }
  0x41   :  { %637 = vmatpush1.xpose.msra.mxu1 %v98_v61  ;;  %568 = vmatprep.subr.mxu0 %v75_v62 }
  0x42   :  { %638 = vmatprep.subr.mxu1 %v77_v63 }
  0x44   :  { %569 = vmatpush1.xpose.msra.mxu0 %v74_v0 }
  0x45   :  { %639 = vmatpush1.xpose.msra.mxu1 %v76_v2  ;;  %570 = vmatprep.subr.mxu0 %v53_v3 }
  0x46   :  { %640 = vmatprep.subr.mxu1 %v55_v4 }
  0x48   :  { %571 = vmatpush1.xpose.msra.mxu0 %v52_v5 }
  0x49   :  { %641 = vmatpush1.xpose.msra.mxu1 %v54_v6  ;;  %704 = vmatprep.subr.mxu0 %v123_v7 }
  0x4a   :  { %774 = vmatprep.subr.mxu1 %v125_v10 }
  0x4b   :  { %605 = vmatmul.mubr.f32.vlgmr.msra.gmra.mxu0 %v171_v11  ;;  %v132_v11 = vld [vmem:[%s1247_s2] sm:$0x1]  ;;  %s1131_s2 = smov [#allocation7]  }
  0x4c   :  { %675 = vmatmul.mubr.f32.vlgmr.msra.gmra.mxu1 %v179_v12  ;;  %705 = vmatpush1.xpose.msra.mxu0 %v122_v13  ;;  %s1041_s24 = sshll.u32 %s1131_s2, 4  ;;  %s1042_s24 = int_to_ptr.vmem [resolvable:$true] %s1041_s24 }
  0x4d   :  { %775 = vmatpush1.xpose.msra.mxu1 %v124_v14  ;;  %706 = vmatprep.subr.mxu0 %v101_v15  ;;  %s1101_s25 = scalar_lea.vmem %s1042_s24, 16  ;;  %s1105_s26 = scalar_lea.vmem %s1042_s24, 32 }
  0x4e   :  { %776 = vmatprep.subr.mxu1 %v103_v16  ;;  %744 = vmatprep.mubr.f32.mxu0 %v191_v17  ;;  %p1102_p10 = scmp.ne.s32.totalorder %s1042_s24, %s1101_s25  ;;  %p1106_p11 = scmp.lt.s32.totalorder %s1042_s24, %s1042_s24 }
  0x4f   :  { %814 = vmatprep.mubr.f32.mxu1 %v199_v18  ;;  %p1107_p12 = scmp.lt.s32.totalorder %s1105_s26, %s1101_s25 }
  0x50   :  { %707 = vmatpush1.xpose.msra.mxu0 %v100_v19 }
  0x51   :  { %777 = vmatpush1.xpose.msra.mxu1 %v102_v20  ;;  %708 = vmatprep.subr.mxu0 %v79_v23  ;;  %p1108_p13 = por %p1107_p12, %p1106_p11 }
  0x52   :  { %778 = vmatprep.subr.mxu1 %v81_v24 }
  0x53   :  { %p1109_p0 = pnand %p1108_p13, %p1102_p10 }
  0x54   :  { %709 = vmatpush1.xpose.msra.mxu0 %v78_v25 }
  0x55   :  { %779 = vmatpush1.xpose.msra.mxu1 %v80_v26  ;;  %710 = vmatprep.subr.mxu0 %v57_v29 }
  0x56   :  { %780 = vmatprep.subr.mxu1 %v59_v28 }
  0x58   :  { %711 = vmatpush1.xpose.msra.mxu0 %v56_v30 }
  0x59   :  { %781 = vmatpush1.xpose.msra.mxu1 %v58_v31  ;;  %844 = vmatprep.subr.mxu0 %v127_v32 }
  0x5a   :  { %914 = vmatprep.subr.mxu1 %v129_v33 }
  0x5b   :  { %745 = vmatmul.mubr.f32.vlgmr.msra.gmra.mxu0 %v187_v34 }
  0x5c   :  { %815 = vmatmul.mubr.f32.vlgmr.msra.gmra.mxu1 %v195_v35  ;;  %845 = vmatpush1.xpose.msra.mxu0 %v126_v37 }
  0x5d   :  { %915 = vmatpush1.xpose.msra.mxu1 %v128_v38  ;;  %846 = vmatprep.subr.mxu0 %v105_v39 }
  0x5e   :  { %916 = vmatprep.subr.mxu1 %v107_v40  ;;  %884 = vmatprep.mubr.f32.mxu0 %v207_v41 }
  0x5f   :  { %954 = vmatprep.mubr.f32.mxu1 %v215_v42 }
  0x60   :  { %847 = vmatpush1.xpose.msra.mxu0 %v104_v1 }
  0x61   :  { %917 = vmatpush1.xpose.msra.mxu1 %v106_v43  ;;  %848 = vmatprep.subr.mxu0 %v83_v44 }
  0x62   :  { %918 = vmatprep.subr.mxu1 %v85_v46 }
  0x64   :  { %849 = vmatpush1.xpose.msra.mxu0 %v82_v47 }
  0x65   :  { %919 = vmatpush1.xpose.msra.mxu1 %v84_v8  ;;  %850 = vmatprep.subr.mxu0 %v61_v48 }
  0x66   :  { %920 = vmatprep.subr.mxu1 %v63_v9 }
  0x68   :  { %851 = vmatpush1.xpose.msra.mxu0 %v60_v49 }
  0x69   :  { %921 = vmatpush1.xpose.msra.mxu1 %v62_v50  ;;  %1051 = vmatprep.subr.msk.mxu0 %vm245_vm0, %v131_v51 }
  0x6b   :  { %885 = vmatmul.mubr.f32.vlgmr.msra.gmra.mxu0 %v203_v52 }
  0x6c   :  { %955 = vmatmul.mubr.f32.vlgmr.msra.gmra.mxu1 %v211_v53  ;;  %985 = vmatpush1.xpose.msra.mxu0 %v130_v55 }
  0x6d   :  { %1055 = vmatprep.mubr.msk.f32.mxu0 %vm245_vm0, %v223_v54  ;;  %1052 = vmatprep.subr.msk.mxu0 %vm245_vm0, %v109_v56 }
  0x70   :  { %987 = vmatpush1.xpose.msra.mxu0 %v108_v21 }
  0x71   :  { %1053 = vmatprep.subr.msk.mxu0 %vm245_vm0, %v87_v57 }
  0x74   :  { %989 = vmatpush1.xpose.msra.mxu0 %v86_v22 }
  0x75   :  { %1054 = vmatprep.subr.msk.mxu0 %vm245_vm0, %v65_v58 }
  0x78   :  { %991 = vmatpush1.xpose.msra.mxu0 %v64_v27 }
  0x7b   :  { %1025 = vmatmul.mubr.f32.vlgmr.msra.gmra.mxu0 %v219_v59 }
  0xeb   :  { %v326_v60 = vpop.f32.mrf.mxu0 }
  0xec   :  { %v396_v61 = vpop.f32.mrf.mxu1  ;;  %v327_v15 = vadd.f32 %v326_v60, %v132_v11 }
  0xed   :  { %v328_v62 = vpop.f32.mrf.mxu0 }
  0xee   :  { %v398_v63 = vpop.f32.mrf.mxu1  ;;  %v397_v16 = vadd.f32 %v396_v61, %v327_v15 }
  0xfb   :  { %v466_v0 = vpop.f32.mrf.mxu0 }
  0xfc   :  { %v536_v2 = vpop.f32.mrf.mxu1  ;;  %v467_v17 = vadd.f32 %v466_v0, %v397_v16 }
  0xfd   :  { %v468_v3 = vpop.f32.mrf.mxu0 }
  0xfe   :  { %v538_v4 = vpop.f32.mrf.mxu1  ;;  %v537_v18 = vadd.f32 %v536_v2, %v467_v17 }
 0x10b   :  { %v606_v5 = vpop.f32.mrf.mxu0 }
 0x10c   :  { %v676_v6 = vpop.f32.mrf.mxu1  ;;  %v607_v19 = vadd.f32 %v606_v5, %v537_v18 }
 0x10d   :  { %v608_v7 = vpop.f32.mrf.mxu0 }
 0x10e   :  { %v678_v10 = vpop.f32.mrf.mxu1  ;;  %v677_v26 = vadd.f32 %v676_v6, %v607_v19 }
 0x11b   :  { %v746_v12 = vpop.f32.mrf.mxu0 }
 0x11c   :  { %v816_v45 = vpop.f32.mrf.mxu1  ;;  %v747_v29 = vadd.f32 %v746_v12, %v677_v26 }
 0x11d   :  { %v748_v13 = vpop.f32.mrf.mxu0 }
 0x11e   :  { %v818_v14 = vpop.f32.mrf.mxu1  ;;  %v817_v28 = vadd.f32 %v816_v45, %v747_v29 }
 0x12b   :  { %v886_v20 = vpop.f32.mrf.mxu0 }
 0x12c   :  { %v956_v23 = vpop.f32.mrf.mxu1  ;;  %v887_v30 = vadd.f32 %v886_v20, %v817_v28 }
 0x12d   :  { %v888_v24 = vpop.f32.mrf.mxu0 }
 0x12e   :  { %v958_v25 = vpop.f32.mrf.mxu1  ;;  %v957_v31 = vadd.f32 %v956_v23, %v887_v30 }
 0x13b   :  { %v1026_v32 = vpop.f32.mrf.mxu0 }
 0x13c   :  { %v1027_v33 = vadd.f32 %v1026_v32, %v957_v31 }
 0x13d   :  { %v1028_v34 = vpop.f32.mrf.mxu0 }
 0x13e   :  { %vm1030_vm1 = vcmp.gt.f32.partialorder %v1027_v33, 0.0  ;;  %v1031_v35 = vmul.f32 0.01, %v1027_v33 }
 0x140   :  { %v1032_v36 = vsel %vm1030_vm1, %v1027_v33, %v1031_v35 }
 0x141   :  { %1034 = vst.msk [vmem:[#allocation7] sm:$0x1] %vm1033_vm2, %v1032_v36 }
 0x142   :  { %1112 = shalt.err (!%p1109_p0)
}
 0x143   :  { %1044 = dma.vmem_to_hbm [thread:$0]  %s1042_s24, 16, %s1248_s3, [#allocation4]  }
 0x144   :  { %1125 = dma.done.wait [#allocation4], 16  }
 0x145   :  { %1126 = vsyncadd [#allocation4], 4294967280 }
 0x146   :  { %1048 = vsyncpa [#allocation3], 1 }
 0x147   :  { %1049 = vsyncpa [#allocation6], 1 }
 0x148   :  { %1050 = vsyncpa [#allocation4], 1 }

</bundles_post_ra>
